<compile_context>
chip_gen: v5e
topology: v5e:2x2
jax: 0.10.0
libtpu: 0.0.40
codegen_flags: <defaults>
</compile_context>

<pallas_src>
import functools
import numpy as np
import jax
import jax.numpy as jnp
from jax import lax
from jax.experimental import pallas as pl
from jax.experimental.pallas import tpu as pltpu


_TAPS = tuple((dh, dw) for dh in (-1, 0, 1) for dw in (-1, 0, 1))


def _blender_kernel(pg_ref, xreal_ref, xfakes_ref, mask_ref, valid_ref,
                    w1_ref, b1_ref, w2_ref, b2_ref, out_ref, s1_ref,
                    *, H, W, C, D, tau, hard, taps_per_chunk):
    HWp = out_ref.shape[-1]          # lane-padded flattened spatial size
    cin1 = C + 1
    K1 = s1_ref.shape[0]

    # ---- gumbel_softmax(policy_action, tau, hard, dim=1)  (f32, tiny vector)
    pg = pg_ref[0]                                        # [1, 2D]
    y = (pg[:, :D] + pg[:, D:]) / tau
    y = y - jnp.max(y, axis=-1, keepdims=True)
    e = jnp.exp(y)
    gp = e / jnp.sum(e, axis=-1, keepdims=True)           # [1, D]
    if hard:
        # exact one-hot at the first argmax (matches torch tie behaviour)
        iota_d = lax.broadcasted_iota(jnp.int32, gp.shape, 1)
        is_max = gp >= jnp.max(gp, axis=-1, keepdims=True)
        first = jnp.min(jnp.where(is_max, iota_d, D), axis=-1, keepdims=True)
        gp = (iota_d == first).astype(jnp.float32)

    # ---- main_method = einsum('d,dcp->cp', gumbel_policy, x_fakes).
    # D is tiny so a short VPU broadcast-MAC chain beats an MXU relayout.
    xf = xfakes_ref[0].astype(jnp.float32)                # [D*C, HWp]
    main = gp[:, 0:1] * xf[0:C, :]
    for d in range(1, D):
        main = main + gp[:, d:d + 1] * xf[d * C:(d + 1) * C, :]

    m = mask_ref[0]                                       # [1, HWp]
    xr = xreal_ref[0]                                     # [C, HWp]
    blended = xr * (1.0 - m) + main * m                   # [C, HWp] f32

    # ---- conv1 via im2col (K1 = 48): taps stored contiguously in a bf16
    # scratch using 16-row tile-aligned chunk stores; boundary masks come from
    # the resident host-precomputed `valid_ref` input.
    a_in = jnp.concatenate([blended, m], axis=0)          # [cin1, HWp] f32

    def shifted(t):
        # y[r, h*W + w] = a_in[r, (h+dh)*W + (w+dw)], zero outside the image.
        dh, dw = _TAPS[t]
        s = dh * W + dw
        y = a_in if s == 0 else pltpu.roll(a_in, shift=(-s) % HWp, axis=1)
        return y * valid_ref[t:t + 1, :]                  # f32 mask multiply

    n_chunks = K1 // 16
    for c in range(n_chunks):
        pieces = []
        for slot in range(taps_per_chunk):
            t = c * taps_per_chunk + slot
            if t < 9:
                pieces.append(shifted(t))
            else:
                pieces.append(jnp.zeros((cin1, HWp), jnp.float32))
        s1_ref[c * 16:(c + 1) * 16, :] = (
            jnp.concatenate(pieces, axis=0).astype(jnp.bfloat16))

    h1 = jnp.dot(w1_ref[...], s1_ref[...],
                 preferred_element_type=jnp.float32)      # [32, HWp]
    h1 = jnp.maximum(h1 + b1_ref[...], 0.0)

    # ---- conv2 (cout = 1): multiply-by-weights first (one [16,32]x[32,HWp]
    # matmul), then 9 single-row lane-rolls + boundary masks + accumulate.
    r = jnp.dot(w2_ref[...], h1.astype(jnp.bfloat16),
                preferred_element_type=jnp.float32)       # [16, HWp]
    acc = jnp.zeros((1, HWp), jnp.float32)
    for t in range(9):
        dh, dw = _TAPS[t]
        s = dh * W + dw
        row = r[t:t + 1, :]
        if s != 0:
            row = pltpu.roll(row, shift=(-s) % HWp, axis=1)
        acc = acc + row * valid_ref[t:t + 1, :]
    h2 = acc + b2_ref[...]                                # [1, HWp]
    alpha = jax.nn.sigmoid(h2) * 0.1 + 0.9                # f32 EUP

    out_ref[0] = xr * (1.0 - alpha) + blended * alpha     # [C, HWp]


def _vmem_limit_bytes():
    cap = 128 * 1024 * 1024
    try:
        info = pltpu.get_tpu_info()
        cap = int(getattr(info, "vmem_capacity_bytes", cap))
    except Exception:
        pass
    # leave ~16 MiB headroom for double-buffered windows / internal scratch;
    # never ask for more than ~100 MiB even on 128 MiB parts.
    return int(max(32 * 1024 * 1024,
                   min(cap - 16 * 1024 * 1024, 100 * 1024 * 1024)))


def adversarial_blender_pallas(x_real, x_fakes, mask, policy_action, gumbel,
                               params, *, training=True, tau=1.0):
    B, C, H, W = x_real.shape
    D = policy_action.shape[1]
    HW = H * W
    HWp = ((HW + 127) // 128) * 128                       # lane-dense last dim

    def _pad_lanes(x):
        return x if HWp == HW else jnp.pad(x, ((0, 0), (0, 0), (0, HWp - HW)))

    # x_fakes flattened to [B, D*C, HWp] and transferred in bf16 (dominant HBM
    # stream); everything else stays f32.
    xf_flat = _pad_lanes(
        jnp.stack(x_fakes, axis=1).reshape(B, D * C, HW)).astype(jnp.bfloat16)
    xr_flat = _pad_lanes(x_real.reshape(B, C, HW).astype(jnp.float32))
    m_flat = _pad_lanes(mask.reshape(B, 1, HW).astype(jnp.float32))
    # logits and gumbel packed into one tiny per-batch row.
    pg = jnp.concatenate([policy_action, gumbel], axis=1)
    pg = pg.reshape(B, 1, 2 * D).astype(jnp.float32)

    w1, b1, w2, b2 = params["w1"], params["b1"], params["w2"], params["b2"]
    cout1, cin1 = w1.shape[0], w1.shape[1]                # 32, C+1
    cout2, cin2 = w2.shape[0], w2.shape[1]                # 1, 32
    assert cin1 == C + 1 and cin2 == cout1 and cout2 == 1
    assert 16 % cin1 == 0, "tap-chunk packing assumes cin1 divides 16"
    taps_per_chunk = 16 // cin1
    K1 = ((9 * cin1 + 15) // 16) * 16                     # 48 for cin1 = 4

    # Host-precomputed boundary-validity masks: valid[t, h*W+w] = 1 iff the
    # tap-(dh,dw) source pixel lies inside the HxW image. Resident input.
    hh = np.arange(H)[:, None]
    ww = np.arange(W)[None, :]
    valid_np = np.zeros((16, HWp), np.float32)
    for t, (dh, dw) in enumerate(_TAPS):
        v = ((hh + dh >= 0) & (hh + dh < H) &
             (ww + dw >= 0) & (ww + dw < W)).astype(np.float32)
        valid_np[t, :HW] = v.reshape(-1)
    valid = jnp.asarray(valid_np)

    # conv1 weights -> im2col layout [cout1, K1], column index = t*cin1 + i.
    w1_flat = jnp.transpose(w1, (2, 3, 1, 0)).reshape(9 * cin1, cout1)
    w1_flat = jnp.pad(w1_flat, ((0, K1 - 9 * cin1), (0, 0)))
    w1_flat = jnp.transpose(w1_flat, (1, 0)).astype(jnp.bfloat16)   # [32, K1]
    # conv2 weights -> per-tap rows [16, 32] (rows 9..15 zero).
    w2_taps = jnp.transpose(w2[0], (1, 2, 0)).reshape(9, cin2)
    w2_taps = jnp.pad(w2_taps, ((0, 16 - 9), (0, 0))).astype(jnp.bfloat16)
    b1c = b1.reshape(cout1, 1).astype(jnp.float32)
    b2c = b2.reshape(cout2, 1).astype(jnp.float32)

    kern = functools.partial(_blender_kernel, H=H, W=W, C=C, D=D, tau=tau,
                             hard=not training, taps_per_chunk=taps_per_chunk)

    out_flat = pl.pallas_call(
        kern,
        out_shape=jax.ShapeDtypeStruct((B, C, HWp), jnp.float32),
        grid_spec=pltpu.PrefetchScalarGridSpec(
            num_scalar_prefetch=0,
            grid=(B,),
            in_specs=[
                pl.BlockSpec((1, 1, 2 * D), lambda b: (b, 0, 0)),      # logits|gumbel
                pl.BlockSpec((1, C, HWp), lambda b: (b, 0, 0)),        # x_real
                pl.BlockSpec((1, D * C, HWp), lambda b: (b, 0, 0)),    # x_fakes
                pl.BlockSpec((1, 1, HWp), lambda b: (b, 0, 0)),        # mask
                pl.BlockSpec((16, HWp), lambda b: (0, 0)),             # boundary masks
                pl.BlockSpec((cout1, K1), lambda b: (0, 0)),           # conv1 W
                pl.BlockSpec((cout1, 1), lambda b: (0, 0)),            # conv1 b
                pl.BlockSpec((16, cin2), lambda b: (0, 0)),            # conv2 W (taps)
                pl.BlockSpec((1, 1), lambda b: (0, 0)),                # conv2 b
            ],
            out_specs=pl.BlockSpec((1, C, HWp), lambda b: (b, 0, 0)),
            scratch_shapes=[
                pltpu.VMEM((K1, HWp), jnp.bfloat16),   # conv1 im2col stack (bf16)
            ],
        ),
        compiler_params=pltpu.CompilerParams(
            dimension_semantics=("parallel",),
            vmem_limit_bytes=_vmem_limit_bytes(),
        ),
    )(pg, xr_flat, xf_flat, m_flat, valid, w1_flat, b1c, w2_taps, b2c)

    if HWp != HW:
        out_flat = out_flat[:, :, :HW]
    return out_flat.reshape(B, C, H, W)


def reference_forward(x_real, x_fakes, mask, policy_action, gumbel, params,
                      *, training=True, tau=1.0):
    """Pure-JAX f32 reference mirroring the PyTorch forward (same gumbel noise)."""
    gp = jax.nn.softmax((policy_action + gumbel) / tau, axis=1)
    if not training:
        gp = (gp >= jnp.max(gp, axis=1, keepdims=True)).astype(gp.dtype)
    xft = jnp.stack(x_fakes, axis=1)
    main = jnp.einsum("bd,bdchw->bchw", gp, xft)
    blended = x_real * (1.0 - mask) + main * mask
    ai = jnp.concatenate([blended, mask], axis=1)
    dn = ("NCHW", "OIHW", "NCHW")
    h1 = lax.conv_general_dilated(ai, params["w1"], (1, 1), "SAME",
                                  dimension_numbers=dn)
    h1 = jnp.maximum(h1 + params["b1"][None, :, None, None], 0.0)
    h2 = lax.conv_general_dilated(h1, params["w2"], (1, 1), "SAME",
                                  dimension_numbers=dn)
    h2 = h2 + params["b2"][None, :, None, None]
    base_alpha = jax.nn.sigmoid(h2)
    alpha = base_alpha * 0.1 + 0.9
    return x_real * (1.0 - alpha) + blended * alpha


def init_params(key):
    k1, k2, k3, k4 = jax.random.split(key, 4)
    w1 = jax.random.normal(k1, (32, 4, 3, 3), jnp.float32) / np.sqrt(4 * 9)
    b1 = jax.random.normal(k2, (32,), jnp.float32) * 0.01
    w2 = jax.random.normal(k3, (1, 32, 3, 3), jnp.float32) / np.sqrt(32 * 9)
    b2 = jax.random.normal(k4, (1,), jnp.float32) * 0.01
    return {"w1": w1, "b1": b1, "w2": w2, "b2": b2}


if __name__ == "__main__":
    key = jax.random.PRNGKey(0)
    kp, kx, kf, km, ka, kg = jax.random.split(key, 6)

    B, C, H, W, D = 2, 3, 16, 16, 4   # x_real: [B,3,H,W], mask: [B,1,H,W]
    params = init_params(kp)

    x_real = jax.random.normal(kx, (B, C, H, W), jnp.float32)
    x_fakes = [jax.random.normal(jax.random.fold_in(kf, i), (B, C, H, W),
                                 jnp.float32) for i in range(D)]
    mask = (jax.random.uniform(km, (B, 1, H, W)) > 0.5).astype(jnp.float32)
    policy_action = jax.random.normal(ka, (B, D), jnp.float32)

    # F.gumbel_softmax samples its noise internally; here it is sampled
    # host-side with a fixed key and shared between kernel and reference.
    u = jax.random.uniform(kg, (B, D), jnp.float32, minval=1e-6, maxval=1.0)
    gumbel = -jnp.log(-jnp.log(u))

    # Module default state is training=True -> hard=False (soft gumbel-softmax).
    out = adversarial_blender_pallas(x_real, x_fakes, mask, policy_action,
                                     gumbel, params, training=True)
    out = jax.block_until_ready(out)

    ref = jax.block_until_ready(
        reference_forward(x_real, x_fakes, mask, policy_action, gumbel, params,
                          training=True))

    assert out.shape == (B, C, H, W)
    # Tolerance reflects the deliberate bf16 transfer / MXU-operand path for
    # x_fakes, the im2col stack and the conv weights (elementwise math is f32).
    if not np.allclose(np.asarray(out), np.asarray(ref), atol=2e-2, rtol=2e-2):
        raise AssertionError("Pallas kernel output mismatch vs JAX reference")
    print("KERNEL_OK")
</pallas_src>

<mosaic_0001>
module attributes {stable_mosaic.version = 11 : i64} {
  func.func @_blender_kernel(%arg0: i32, %arg1: memref<1x1x8xf32, #tpu.memory_space<vmem>>, %arg2: memref<1x3x256xf32, #tpu.memory_space<vmem>>, %arg3: memref<1x12x256xbf16, #tpu.memory_space<vmem>>, %arg4: memref<1x1x256xf32, #tpu.memory_space<vmem>>, %arg5: memref<16x256xf32, #tpu.memory_space<vmem>>, %arg6: memref<32x48xbf16, #tpu.memory_space<vmem>>, %arg7: memref<32x1xf32, #tpu.memory_space<vmem>>, %arg8: memref<16x32xbf16, #tpu.memory_space<vmem>>, %arg9: memref<1x1xf32, #tpu.memory_space<vmem>>, %arg10: memref<1x3x256xf32, #tpu.memory_space<vmem>>, %arg11: memref<48x256xbf16, #tpu.memory_space<vmem>>) attributes {dimension_semantics = [#tpu.dimension_semantics<parallel>], iteration_bounds = array<i64: 2>, scalar_prefetch = 0 : i64, scratch_operands = 1 : i64, tpu.core_type = #tpu.core_type<tc>, window_params = [{transform_indices = @transform_0, window_bounds = array<i64: 1, 1, 8>}, {transform_indices = @transform_1, window_bounds = array<i64: 1, 3, 256>}, {transform_indices = @transform_2, window_bounds = array<i64: 1, 12, 256>}, {transform_indices = @transform_3, window_bounds = array<i64: 1, 1, 256>}, {pipeline_mode = #tpu.pipeline_mode<synchronous>, transform_indices = @transform_4, window_bounds = array<i64: 16, 256>}, {pipeline_mode = #tpu.pipeline_mode<synchronous>, transform_indices = @transform_5, window_bounds = array<i64: 32, 48>}, {pipeline_mode = #tpu.pipeline_mode<synchronous>, transform_indices = @transform_6, window_bounds = array<i64: 32, 1>}, {pipeline_mode = #tpu.pipeline_mode<synchronous>, transform_indices = @transform_7, window_bounds = array<i64: 16, 32>}, {pipeline_mode = #tpu.pipeline_mode<synchronous>, transform_indices = @transform_8, window_bounds = array<i64: 1, 1>}, {transform_indices = @transform_9, window_bounds = array<i64: 1, 3, 256>}]} {
    %c0 = arith.constant 0 : index
    %c0_0 = arith.constant 0 : index
    %c0_1 = arith.constant 0 : index
    %0 = vector.load %arg1[%c0, %c0_0, %c0_1] : memref<1x1x8xf32, #tpu.memory_space<vmem>>, vector<1x1x8xf32>
    %1 = vector.shape_cast %0 : vector<1x1x8xf32> to vector<1x8xf32>
    %2 = vector.extract_strided_slice %1 {offsets = [0, 0], sizes = [1, 4], strides = [1, 1]} : vector<1x8xf32> to vector<1x4xf32>
    %3 = vector.extract_strided_slice %1 {offsets = [0, 4], sizes = [1, 4], strides = [1, 1]} : vector<1x8xf32> to vector<1x4xf32>
    %4 = arith.addf %2, %3 : vector<1x4xf32>
    %cst = arith.constant 1.000000e+00 : f32
    %5 = vector.broadcast %cst : f32 to vector<1x4xf32>
    %6 = arith.divf %4, %5 : vector<1x4xf32>
    %cst_2 = arith.constant dense<0xFF800000> : vector<1xf32>
    %7 = vector.multi_reduction <maximumf>, %6, %cst_2 [1] : vector<1x4xf32> to vector<1xf32>
    %8 = vector.shape_cast %7 : vector<1xf32> to vector<1x1xf32>
    %9 = vector.broadcast %8 : vector<1x1xf32> to vector<1x4xf32>
    %10 = arith.subf %6, %9 : vector<1x4xf32>
    %11 = math.exp %10 : vector<1x4xf32>
    %cst_3 = arith.constant dense<0.000000e+00> : vector<1xf32>
    %12 = vector.multi_reduction <add>, %11, %cst_3 [1] : vector<1x4xf32> to vector<1xf32>
    %13 = vector.shape_cast %12 : vector<1xf32> to vector<1x1xf32>
    %14 = vector.broadcast %13 : vector<1x1xf32> to vector<1x4xf32>
    %15 = arith.divf %11, %14 : vector<1x4xf32>
    %c0_4 = arith.constant 0 : index
    %c0_5 = arith.constant 0 : index
    %c0_6 = arith.constant 0 : index
    %16 = vector.load %arg3[%c0_4, %c0_5, %c0_6] : memref<1x12x256xbf16, #tpu.memory_space<vmem>>, vector<1x12x256xbf16>
    %17 = vector.shape_cast %16 : vector<1x12x256xbf16> to vector<12x256xbf16>
    %18 = arith.extf %17 : vector<12x256xbf16> to vector<12x256xf32>
    %19 = vector.extract_strided_slice %15 {offsets = [0, 0], sizes = [1, 1], strides = [1, 1]} : vector<1x4xf32> to vector<1x1xf32>
    %20 = vector.extract_strided_slice %18 {offsets = [0, 0], sizes = [3, 256], strides = [1, 1]} : vector<12x256xf32> to vector<3x256xf32>
    %21 = vector.broadcast %19 : vector<1x1xf32> to vector<3x256xf32>
    %22 = arith.mulf %21, %20 : vector<3x256xf32>
    %23 = vector.extract_strided_slice %15 {offsets = [0, 1], sizes = [1, 1], strides = [1, 1]} : vector<1x4xf32> to vector<1x1xf32>
    %24 = vector.extract_strided_slice %18 {offsets = [3, 0], sizes = [3, 256], strides = [1, 1]} : vector<12x256xf32> to vector<3x256xf32>
    %25 = vector.broadcast %23 : vector<1x1xf32> to vector<3x256xf32>
    %26 = arith.mulf %25, %24 : vector<3x256xf32>
    %27 = arith.addf %22, %26 : vector<3x256xf32>
    %28 = vector.extract_strided_slice %15 {offsets = [0, 2], sizes = [1, 1], strides = [1, 1]} : vector<1x4xf32> to vector<1x1xf32>
    %29 = vector.extract_strided_slice %18 {offsets = [6, 0], sizes = [3, 256], strides = [1, 1]} : vector<12x256xf32> to vector<3x256xf32>
    %30 = vector.broadcast %28 : vector<1x1xf32> to vector<3x256xf32>
    %31 = arith.mulf %30, %29 : vector<3x256xf32>
    %32 = arith.addf %27, %31 : vector<3x256xf32>
    %33 = vector.extract_strided_slice %15 {offsets = [0, 3], sizes = [1, 1], strides = [1, 1]} : vector<1x4xf32> to vector<1x1xf32>
    %34 = vector.extract_strided_slice %18 {offsets = [9, 0], sizes = [3, 256], strides = [1, 1]} : vector<12x256xf32> to vector<3x256xf32>
    %35 = vector.broadcast %33 : vector<1x1xf32> to vector<3x256xf32>
    %36 = arith.mulf %35, %34 : vector<3x256xf32>
    %37 = arith.addf %32, %36 : vector<3x256xf32>
    %c0_7 = arith.constant 0 : index
    %c0_8 = arith.constant 0 : index
    %c0_9 = arith.constant 0 : index
    %38 = vector.load %arg4[%c0_7, %c0_8, %c0_9] : memref<1x1x256xf32, #tpu.memory_space<vmem>>, vector<1x1x256xf32>
    %39 = vector.shape_cast %38 : vector<1x1x256xf32> to vector<1x256xf32>
    %c0_10 = arith.constant 0 : index
    %c0_11 = arith.constant 0 : index
    %c0_12 = arith.constant 0 : index
    %40 = vector.load %arg2[%c0_10, %c0_11, %c0_12] : memref<1x3x256xf32, #tpu.memory_space<vmem>>, vector<1x3x256xf32>
    %41 = vector.shape_cast %40 : vector<1x3x256xf32> to vector<3x256xf32>
    %cst_13 = arith.constant 1.000000e+00 : f32
    %42 = vector.broadcast %cst_13 : f32 to vector<1x256xf32>
    %43 = arith.subf %42, %39 : vector<1x256xf32>
    %44 = vector.broadcast %43 : vector<1x256xf32> to vector<3x256xf32>
    %45 = arith.mulf %41, %44 : vector<3x256xf32>
    %46 = vector.broadcast %39 : vector<1x256xf32> to vector<3x256xf32>
    %47 = arith.mulf %37, %46 : vector<3x256xf32>
    %48 = arith.addf %45, %47 : vector<3x256xf32>
    %49 = tpu.concatenate %48, %39 in 0 : vector<3x256xf32>, vector<1x256xf32> -> vector<4x256xf32>
    %c17_i32 = arith.constant 17 : i32
    %50 = tpu.dynamic_rotate %49 by %c17_i32 dim 1 : vector<4x256xf32>, i32 -> vector<4x256xf32>
    %c0_14 = arith.constant 0 : index
    %c0_15 = arith.constant 0 : index
    %51 = vector.load %arg5[%c0_14, %c0_15] : memref<16x256xf32, #tpu.memory_space<vmem>>, vector<1x256xf32>
    %52 = vector.broadcast %51 : vector<1x256xf32> to vector<4x256xf32>
    %53 = arith.mulf %50, %52 : vector<4x256xf32>
    %c16_i32 = arith.constant 16 : i32
    %54 = tpu.dynamic_rotate %49 by %c16_i32 dim 1 : vector<4x256xf32>, i32 -> vector<4x256xf32>
    %c1 = arith.constant 1 : index
    %c0_16 = arith.constant 0 : index
    %55 = vector.load %arg5[%c1, %c0_16] : memref<16x256xf32, #tpu.memory_space<vmem>>, vector<1x256xf32>
    %56 = vector.broadcast %55 : vector<1x256xf32> to vector<4x256xf32>
    %57 = arith.mulf %54, %56 : vector<4x256xf32>
    %c15_i32 = arith.constant 15 : i32
    %58 = tpu.dynamic_rotate %49 by %c15_i32 dim 1 : vector<4x256xf32>, i32 -> vector<4x256xf32>
    %c2 = arith.constant 2 : index
    %c0_17 = arith.constant 0 : index
    %59 = vector.load %arg5[%c2, %c0_17] : memref<16x256xf32, #tpu.memory_space<vmem>>, vector<1x256xf32>
    %60 = vector.broadcast %59 : vector<1x256xf32> to vector<4x256xf32>
    %61 = arith.mulf %58, %60 : vector<4x256xf32>
    %c1_i32 = arith.constant 1 : i32
    %62 = tpu.dynamic_rotate %49 by %c1_i32 dim 1 : vector<4x256xf32>, i32 -> vector<4x256xf32>
    %c3 = arith.constant 3 : index
    %c0_18 = arith.constant 0 : index
    %63 = vector.load %arg5[%c3, %c0_18] : memref<16x256xf32, #tpu.memory_space<vmem>>, vector<1x256xf32>
    %64 = vector.broadcast %63 : vector<1x256xf32> to vector<4x256xf32>
    %65 = arith.mulf %62, %64 : vector<4x256xf32>
    %66 = tpu.concatenate %53, %57, %61, %65 in 0 : vector<4x256xf32>, vector<4x256xf32>, vector<4x256xf32>, vector<4x256xf32> -> vector<16x256xf32>
    %67 = arith.truncf %66 : vector<16x256xf32> to vector<16x256xbf16>
    %c0_19 = arith.constant 0 : index
    %c0_20 = arith.constant 0 : index
    %68 = vector.load %arg11[%c0_19, %c0_20] : memref<48x256xbf16, #tpu.memory_space<vmem>>, vector<16x256xbf16>
    tpu.vector_store %arg11[%c0_19, %c0_20], %67 {strides = array<i32>} : memref<48x256xbf16, #tpu.memory_space<vmem>>, vector<16x256xbf16>,
    %c4 = arith.constant 4 : index
    %c0_21 = arith.constant 0 : index
    %69 = vector.load %arg5[%c4, %c0_21] : memref<16x256xf32, #tpu.memory_space<vmem>>, vector<1x256xf32>
    %70 = vector.broadcast %69 : vector<1x256xf32> to vector<4x256xf32>
    %71 = arith.mulf %49, %70 : vector<4x256xf32>
    %c255_i32 = arith.constant 255 : i32
    %72 = tpu.dynamic_rotate %49 by %c255_i32 dim 1 : vector<4x256xf32>, i32 -> vector<4x256xf32>
    %c5 = arith.constant 5 : index
    %c0_22 = arith.constant 0 : index
    %73 = vector.load %arg5[%c5, %c0_22] : memref<16x256xf32, #tpu.memory_space<vmem>>, vector<1x256xf32>
    %74 = vector.broadcast %73 : vector<1x256xf32> to vector<4x256xf32>
    %75 = arith.mulf %72, %74 : vector<4x256xf32>
    %c241_i32 = arith.constant 241 : i32
    %76 = tpu.dynamic_rotate %49 by %c241_i32 dim 1 : vector<4x256xf32>, i32 -> vector<4x256xf32>
    %c6 = arith.constant 6 : index
    %c0_23 = arith.constant 0 : index
    %77 = vector.load %arg5[%c6, %c0_23] : memref<16x256xf32, #tpu.memory_space<vmem>>, vector<1x256xf32>
    %78 = vector.broadcast %77 : vector<1x256xf32> to vector<4x256xf32>
    %79 = arith.mulf %76, %78 : vector<4x256xf32>
    %c240_i32 = arith.constant 240 : i32
    %80 = tpu.dynamic_rotate %49 by %c240_i32 dim 1 : vector<4x256xf32>, i32 -> vector<4x256xf32>
    %c7 = arith.constant 7 : index
    %c0_24 = arith.constant 0 : index
    %81 = vector.load %arg5[%c7, %c0_24] : memref<16x256xf32, #tpu.memory_space<vmem>>, vector<1x256xf32>
    %82 = vector.broadcast %81 : vector<1x256xf32> to vector<4x256xf32>
    %83 = arith.mulf %80, %82 : vector<4x256xf32>
    %84 = tpu.concatenate %71, %75, %79, %83 in 0 : vector<4x256xf32>, vector<4x256xf32>, vector<4x256xf32>, vector<4x256xf32> -> vector<16x256xf32>
    %85 = arith.truncf %84 : vector<16x256xf32> to vector<16x256xbf16>
    %c16 = arith.constant 16 : index
    %c0_25 = arith.constant 0 : index
    %86 = vector.load %arg11[%c16, %c0_25] : memref<48x256xbf16, #tpu.memory_space<vmem>>, vector<16x256xbf16>
    tpu.vector_store %arg11[%c16, %c0_25], %85 {strides = array<i32>} : memref<48x256xbf16, #tpu.memory_space<vmem>>, vector<16x256xbf16>,
    %c239_i32 = arith.constant 239 : i32
    %87 = tpu.dynamic_rotate %49 by %c239_i32 dim 1 : vector<4x256xf32>, i32 -> vector<4x256xf32>
    %c8 = arith.constant 8 : index
    %c0_26 = arith.constant 0 : index
    %88 = vector.load %arg5[%c8, %c0_26] : memref<16x256xf32, #tpu.memory_space<vmem>>, vector<1x256xf32>
    %89 = vector.broadcast %88 : vector<1x256xf32> to vector<4x256xf32>
    %90 = arith.mulf %87, %89 : vector<4x256xf32>
    %cst_27 = arith.constant 0.000000e+00 : f32
    %91 = vector.broadcast %cst_27 : f32 to vector<4x256xf32>
    %cst_28 = arith.constant 0.000000e+00 : f32
    %92 = vector.broadcast %cst_28 : f32 to vector<4x256xf32>
    %cst_29 = arith.constant 0.000000e+00 : f32
    %93 = vector.broadcast %cst_29 : f32 to vector<4x256xf32>
    %94 = tpu.concatenate %90, %91, %92, %93 in 0 : vector<4x256xf32>, vector<4x256xf32>, vector<4x256xf32>, vector<4x256xf32> -> vector<16x256xf32>
    %95 = arith.truncf %94 : vector<16x256xf32> to vector<16x256xbf16>
    %c32 = arith.constant 32 : index
    %c0_30 = arith.constant 0 : index
    %96 = vector.load %arg11[%c32, %c0_30] : memref<48x256xbf16, #tpu.memory_space<vmem>>, vector<16x256xbf16>
    tpu.vector_store %arg11[%c32, %c0_30], %95 {strides = array<i32>} : memref<48x256xbf16, #tpu.memory_space<vmem>>, vector<16x256xbf16>,
    %c0_31 = arith.constant 0 : index
    %c0_32 = arith.constant 0 : index
    %97 = vector.load %arg6[%c0_31, %c0_32] : memref<32x48xbf16, #tpu.memory_space<vmem>>, vector<32x48xbf16>
    %c0_33 = arith.constant 0 : index
    %c0_34 = arith.constant 0 : index
    %98 = vector.load %arg11[%c0_33, %c0_34] : memref<48x256xbf16, #tpu.memory_space<vmem>>, vector<48x256xbf16>
    %cst_35 = arith.constant dense<0.000000e+00> : vector<32x256xf32>
    %99 = tpu.matmul %97, %98, %cst_35 {dimension_numbers = #tpu.dot_dimension_numbers<[1], [0], [0], [1], [0, 0, 1, 1], [], []>} : vector<32x48xbf16>, vector<48x256xbf16>, vector<32x256xf32> -> vector<32x256xf32>
    %c0_36 = arith.constant 0 : index
    %c0_37 = arith.constant 0 : index
    %100 = vector.load %arg7[%c0_36, %c0_37] : memref<32x1xf32, #tpu.memory_space<vmem>>, vector<32x1xf32>
    %101 = vector.broadcast %100 : vector<32x1xf32> to vector<32x256xf32>
    %102 = arith.addf %99, %101 : vector<32x256xf32>
    %cst_38 = arith.constant 0.000000e+00 : f32
    %103 = vector.broadcast %cst_38 : f32 to vector<32x256xf32>
    %104 = arith.maximumf %102, %103 : vector<32x256xf32>
    %c0_39 = arith.constant 0 : index
    %c0_40 = arith.constant 0 : index
    %105 = vector.load %arg8[%c0_39, %c0_40] : memref<16x32xbf16, #tpu.memory_space<vmem>>, vector<16x32xbf16>
    %106 = arith.truncf %104 : vector<32x256xf32> to vector<32x256xbf16>
    %cst_41 = arith.constant dense<0.000000e+00> : vector<16x256xf32>
    %107 = tpu.matmul %105, %106, %cst_41 {dimension_numbers = #tpu.dot_dimension_numbers<[1], [0], [0], [1], [0, 0, 1, 1], [], []>} : vector<16x32xbf16>, vector<32x256xbf16>, vector<16x256xf32> -> vector<16x256xf32>
    %cst_42 = arith.constant 0.000000e+00 : f32
    %108 = vector.broadcast %cst_42 : f32 to vector<1x256xf32>
    %109 = vector.extract_strided_slice %107 {offsets = [0, 0], sizes = [1, 256], strides = [1, 1]} : vector<16x256xf32> to vector<1x256xf32>
    %c17_i32_43 = arith.constant 17 : i32
    %110 = tpu.dynamic_rotate %109 by %c17_i32_43 dim 1 : vector<1x256xf32>, i32 -> vector<1x256xf32>
    %c0_44 = arith.constant 0 : index
    %c0_45 = arith.constant 0 : index
    %111 = vector.load %arg5[%c0_44, %c0_45] : memref<16x256xf32, #tpu.memory_space<vmem>>, vector<1x256xf32>
    %112 = arith.mulf %110, %111 : vector<1x256xf32>
    %113 = arith.addf %108, %112 : vector<1x256xf32>
    %114 = vector.extract_strided_slice %107 {offsets = [1, 0], sizes = [1, 256], strides = [1, 1]} : vector<16x256xf32> to vector<1x256xf32>
    %c16_i32_46 = arith.constant 16 : i32
    %115 = tpu.dynamic_rotate %114 by %c16_i32_46 dim 1 : vector<1x256xf32>, i32 -> vector<1x256xf32>
    %c1_47 = arith.constant 1 : index
    %c0_48 = arith.constant 0 : index
    %116 = vector.load %arg5[%c1_47, %c0_48] : memref<16x256xf32, #tpu.memory_space<vmem>>, vector<1x256xf32>
    %117 = arith.mulf %115, %116 : vector<1x256xf32>
    %118 = arith.addf %113, %117 : vector<1x256xf32>
    %119 = vector.extract_strided_slice %107 {offsets = [2, 0], sizes = [1, 256], strides = [1, 1]} : vector<16x256xf32> to vector<1x256xf32>
    %c15_i32_49 = arith.constant 15 : i32
    %120 = tpu.dynamic_rotate %119 by %c15_i32_49 dim 1 : vector<1x256xf32>, i32 -> vector<1x256xf32>
    %c2_50 = arith.constant 2 : index
    %c0_51 = arith.constant 0 : index
    %121 = vector.load %arg5[%c2_50, %c0_51] : memref<16x256xf32, #tpu.memory_space<vmem>>, vector<1x256xf32>
    %122 = arith.mulf %120, %121 : vector<1x256xf32>
    %123 = arith.addf %118, %122 : vector<1x256xf32>
    %124 = vector.extract_strided_slice %107 {offsets = [3, 0], sizes = [1, 256], strides = [1, 1]} : vector<16x256xf32> to vector<1x256xf32>
    %c1_i32_52 = arith.constant 1 : i32
    %125 = tpu.dynamic_rotate %124 by %c1_i32_52 dim 1 : vector<1x256xf32>, i32 -> vector<1x256xf32>
    %c3_53 = arith.constant 3 : index
    %c0_54 = arith.constant 0 : index
    %126 = vector.load %arg5[%c3_53, %c0_54] : memref<16x256xf32, #tpu.memory_space<vmem>>, vector<1x256xf32>
    %127 = arith.mulf %125, %126 : vector<1x256xf32>
    %128 = arith.addf %123, %127 : vector<1x256xf32>
    %129 = vector.extract_strided_slice %107 {offsets = [4, 0], sizes = [1, 256], strides = [1, 1]} : vector<16x256xf32> to vector<1x256xf32>
    %c4_55 = arith.constant 4 : index
    %c0_56 = arith.constant 0 : index
    %130 = vector.load %arg5[%c4_55, %c0_56] : memref<16x256xf32, #tpu.memory_space<vmem>>, vector<1x256xf32>
    %131 = arith.mulf %129, %130 : vector<1x256xf32>
    %132 = arith.addf %128, %131 : vector<1x256xf32>
    %133 = vector.extract_strided_slice %107 {offsets = [5, 0], sizes = [1, 256], strides = [1, 1]} : vector<16x256xf32> to vector<1x256xf32>
    %c255_i32_57 = arith.constant 255 : i32
    %134 = tpu.dynamic_rotate %133 by %c255_i32_57 dim 1 : vector<1x256xf32>, i32 -> vector<1x256xf32>
    %c5_58 = arith.constant 5 : index
    %c0_59 = arith.constant 0 : index
    %135 = vector.load %arg5[%c5_58, %c0_59] : memref<16x256xf32, #tpu.memory_space<vmem>>, vector<1x256xf32>
    %136 = arith.mulf %134, %135 : vector<1x256xf32>
    %137 = arith.addf %132, %136 : vector<1x256xf32>
    %138 = vector.extract_strided_slice %107 {offsets = [6, 0], sizes = [1, 256], strides = [1, 1]} : vector<16x256xf32> to vector<1x256xf32>
    %c241_i32_60 = arith.constant 241 : i32
    %139 = tpu.dynamic_rotate %138 by %c241_i32_60 dim 1 : vector<1x256xf32>, i32 -> vector<1x256xf32>
    %c6_61 = arith.constant 6 : index
    %c0_62 = arith.constant 0 : index
    %140 = vector.load %arg5[%c6_61, %c0_62] : memref<16x256xf32, #tpu.memory_space<vmem>>, vector<1x256xf32>
    %141 = arith.mulf %139, %140 : vector<1x256xf32>
    %142 = arith.addf %137, %141 : vector<1x256xf32>
    %143 = vector.extract_strided_slice %107 {offsets = [7, 0], sizes = [1, 256], strides = [1, 1]} : vector<16x256xf32> to vector<1x256xf32>
    %c240_i32_63 = arith.constant 240 : i32
    %144 = tpu.dynamic_rotate %143 by %c240_i32_63 dim 1 : vector<1x256xf32>, i32 -> vector<1x256xf32>
    %c7_64 = arith.constant 7 : index
    %c0_65 = arith.constant 0 : index
    %145 = vector.load %arg5[%c7_64, %c0_65] : memref<16x256xf32, #tpu.memory_space<vmem>>, vector<1x256xf32>
    %146 = arith.mulf %144, %145 : vector<1x256xf32>
    %147 = arith.addf %142, %146 : vector<1x256xf32>
    %148 = vector.extract_strided_slice %107 {offsets = [8, 0], sizes = [1, 256], strides = [1, 1]} : vector<16x256xf32> to vector<1x256xf32>
    %c239_i32_66 = arith.constant 239 : i32
    %149 = tpu.dynamic_rotate %148 by %c239_i32_66 dim 1 : vector<1x256xf32>, i32 -> vector<1x256xf32>
    %c8_67 = arith.constant 8 : index
    %c0_68 = arith.constant 0 : index
    %150 = vector.load %arg5[%c8_67, %c0_68] : memref<16x256xf32, #tpu.memory_space<vmem>>, vector<1x256xf32>
    %151 = arith.mulf %149, %150 : vector<1x256xf32>
    %152 = arith.addf %147, %151 : vector<1x256xf32>
    %c0_69 = arith.constant 0 : index
    %c0_70 = arith.constant 0 : index
    %153 = vector.load %arg9[%c0_69, %c0_70] : memref<1x1xf32, #tpu.memory_space<vmem>>, vector<1x1xf32>
    %154 = vector.broadcast %153 : vector<1x1xf32> to vector<1x256xf32>
    %155 = arith.addf %152, %154 : vector<1x256xf32>
    %156 = arith.negf %155 : vector<1x256xf32>
    %157 = math.exp %156 : vector<1x256xf32>
    %cst_71 = arith.constant 1.000000e+00 : f32
    %158 = vector.broadcast %cst_71 : f32 to vector<1x256xf32>
    %159 = arith.addf %158, %157 : vector<1x256xf32>
    %160 = arith.divf %158, %159 : vector<1x256xf32>
    %cst_72 = arith.constant 1.000000e-01 : f32
    %161 = vector.broadcast %cst_72 : f32 to vector<1x256xf32>
    %162 = arith.mulf %160, %161 : vector<1x256xf32>
    %cst_73 = arith.constant 0.899999976 : f32
    %163 = vector.broadcast %cst_73 : f32 to vector<1x256xf32>
    %164 = arith.addf %162, %163 : vector<1x256xf32>
    %cst_74 = arith.constant 1.000000e+00 : f32
    %165 = vector.broadcast %cst_74 : f32 to vector<1x256xf32>
    %166 = arith.subf %165, %164 : vector<1x256xf32>
    %167 = vector.broadcast %166 : vector<1x256xf32> to vector<3x256xf32>
    %168 = arith.mulf %41, %167 : vector<3x256xf32>
    %169 = vector.broadcast %164 : vector<1x256xf32> to vector<3x256xf32>
    %170 = arith.mulf %48, %169 : vector<3x256xf32>
    %171 = arith.addf %168, %170 : vector<3x256xf32>
    %c0_75 = arith.constant 0 : index
    %c0_76 = arith.constant 0 : index
    %c0_77 = arith.constant 0 : index
    %172 = vector.load %arg10[%c0_75, %c0_76, %c0_77] : memref<1x3x256xf32, #tpu.memory_space<vmem>>, vector<1x3x256xf32>
    %173 = vector.shape_cast %172 : vector<1x3x256xf32> to vector<3x256xf32>
    %174 = vector.shape_cast %171 : vector<3x256xf32> to vector<1x3x256xf32>
    tpu.vector_store %arg10[%c0_75, %c0_76, %c0_77], %174 {strides = array<i32>} : memref<1x3x256xf32, #tpu.memory_space<vmem>>, vector<1x3x256xf32>,
    return
  }
  func.func @transform_0(%arg0: i32) -> (i32, i32, i32) {
    %c0_i32 = arith.constant 0 : i32
    %c0_i32_0 = arith.constant 0 : i32
    %c0_i32_1 = arith.constant 0 : i32
    return %arg0, %c0_i32, %c0_i32_0 : i32, i32, i32
  }
  func.func @transform_1(%arg0: i32) -> (i32, i32, i32) {
    %c0_i32 = arith.constant 0 : i32
    %c0_i32_0 = arith.constant 0 : i32
    %c0_i32_1 = arith.constant 0 : i32
    return %arg0, %c0_i32, %c0_i32_0 : i32, i32, i32
  }
  func.func @transform_2(%arg0: i32) -> (i32, i32, i32) {
    %c0_i32 = arith.constant 0 : i32
    %c0_i32_0 = arith.constant 0 : i32
    %c0_i32_1 = arith.constant 0 : i32
    return %arg0, %c0_i32, %c0_i32_0 : i32, i32, i32
  }
  func.func @transform_3(%arg0: i32) -> (i32, i32, i32) {
    %c0_i32 = arith.constant 0 : i32
    %c0_i32_0 = arith.constant 0 : i32
    %c0_i32_1 = arith.constant 0 : i32
    return %arg0, %c0_i32, %c0_i32_0 : i32, i32, i32
  }
  func.func @transform_4(%arg0: i32) -> (i32, i32) {
    %c0_i32 = arith.constant 0 : i32
    %c0_i32_0 = arith.constant 0 : i32
    %c0_i32_1 = arith.constant 0 : i32
    return %c0_i32, %c0_i32_0 : i32, i32
  }
  func.func @transform_5(%arg0: i32) -> (i32, i32) {
    %c0_i32 = arith.constant 0 : i32
    %c0_i32_0 = arith.constant 0 : i32
    %c0_i32_1 = arith.constant 0 : i32
    return %c0_i32, %c0_i32_0 : i32, i32
  }
  func.func @transform_6(%arg0: i32) -> (i32, i32) {
    %c0_i32 = arith.constant 0 : i32
    %c0_i32_0 = arith.constant 0 : i32
    %c0_i32_1 = arith.constant 0 : i32
    return %c0_i32, %c0_i32_0 : i32, i32
  }
  func.func @transform_7(%arg0: i32) -> (i32, i32) {
    %c0_i32 = arith.constant 0 : i32
    %c0_i32_0 = arith.constant 0 : i32
    %c0_i32_1 = arith.constant 0 : i32
    return %c0_i32, %c0_i32_0 : i32, i32
  }
  func.func @transform_8(%arg0: i32) -> (i32, i32) {
    %c0_i32 = arith.constant 0 : i32
    %c0_i32_0 = arith.constant 0 : i32
    %c0_i32_1 = arith.constant 0 : i32
    return %c0_i32, %c0_i32_0 : i32, i32
  }
  func.func @transform_9(%arg0: i32) -> (i32, i32, i32) {
    %c0_i32 = arith.constant 0 : i32
    %c0_i32_0 = arith.constant 0 : i32
    %c0_i32_1 = arith.constant 0 : i32
    return %arg0, %c0_i32, %c0_i32_0 : i32, i32, i32
  }
}

</mosaic_0001>

<bundles_post_ra>
// kernel: tpu_custom_call.1
= control target key start
LH: loop header
LB: loop body
LE: loop exit
PB: predicated region body
PF: predicated region fallthrough
CT: control target
= control target key end

     0   :  { %s1401_s11 = smov 0   ;;  %s1684_s0 = inlined_call_operand.vmem [shape: f32[2,1,8], index: 0, kind: input, shape index: {}]   ;;  %s1685_s1 = inlined_call_operand.vmem [shape: f32[2,3,256], index: 1, kind: input, shape index: {}]   ;;  %s1686_s2 = inlined_call_operand.vmem [shape: bf16[2,12,256], index: 2, kind: input, shape index: {}]   ;;  %s1687_s3 = inlined_call_operand.vmem [shape: f32[2,1,256], index: 3, kind: input, shape index: {}]   ;;  %s1688_s4 = inlined_call_operand.vmem [shape: f32[16,256], index: 4, kind: input, shape index: {}]   ;;  %s1689_s5 = inlined_call_operand.vmem [shape: bf16[32,48], index: 5, kind: input, shape index: {}]   ;;  %s1690_s6 = inlined_call_operand.vmem [shape: f32[32,1], index: 6, kind: input, shape index: {}]   ;;  %s1691_s7 = inlined_call_operand.vmem [shape: bf16[16,32], index: 7, kind: input, shape index: {}]   ;;  %s1692_s8 = inlined_call_operand.<no memory space> [shape: f32[1,1], index: 8, kind: input, shape index: {}]   ;;  %s1693_s9 = inlined_call_operand.vmem [shape: f32[2,3,256], index: 9, kind: output, shape index: {}]  }
   0x1   :  { %v14_v0 = vstv %s1692_s8 }
   0x2   :  { %15 = vst [vmem:[#allocation3] sm:$0x1] %v14_v0 }
   0x3 LB: > { %s1199_s12 = sadd.s32 4294967295, %s1332_s11   ;;  %p1203_p0 = scmp.ge.s32.totalorder %s1332_s11, 1  ;;  %s1332_s11 = sphi %s1401_s11, %s21_s11  }
   0x4   : > { %p316_p1 = scmp.lt.s32.totalorder %s1332_s11, 3 }
   0x6   : > { %p317_p2 = pnand %p1203_p0, %p316_p1 }
   0x7   : > { %p364_p3 = scmp.lt.s32.totalorder (!%p317_p2), %s1199_s12, 1  ;;  %s1334_s15 = smov (!%p317_p2), 124  }
   0x8   : > { %320 = sbr.rel (%p317_p2) target bundleno = 1216 (0x4c0), region = 56  ;;  %s1339_s28 = smov (!%p317_p2), 113  }
   0x9   : > { %s1340_s29 = smov (!%p317_p2), 127   ;;  %s1341_s30 = smov (!%p317_p2), 111  }
   0xa   : > { %s1342_s10 = smov (!%p317_p2), 17   ;;  %s1343_s8 = smov (!%p317_p2), 112  }
   0xb   : > { %s1344_s13 = smov (!%p317_p2), 15  }
   0xd   : > { %s1695_s12 = smov (!%p364_p3, %s1199_s12), 1  ;;  %vm393_vm0 = vcmask 24576   ;;  %v1335_v10 = vmov 2   ;;  %v1336_v11 = vmov 1   ;;  %v1337_v12 = vmov 0  }
   0xe   : > { %s366_s14 = scalar_lea.vmem %s1684_s0, %s1695_s12  ;;  %1308 = vset.pattern.permute.xlu2 %v1335_v10  ;;  %1307 = vset.pattern.permute.xlu1 %v1336_v11  ;;  %v1338_v26 = vmov 3   ;;  %s1274_s16 = sshll.u32 %s1695_s12, 4  ;;  %vm458_vm5 = vcmask 1041408   ;;  %vm490_vm6 = vcmask 1043456   ;;  %vm513_vm7 = vcmask 1042432  }
   0xf   : > { %v387_v1 = vld [vmem:[%s366_s14] sm:$0x1]  ;;  %1313 = vset.pattern.permute.xlu0 %v1337_v12  ;;  %s376_s19 = scalar_lea.vmem %s1686_s2, %s1274_s16  ;;  %s1208_s20 = sshll.u32 %s1695_s12, 1 }
  0x10   : > { %389 = vrot.lane.b32.xlu0 %v387_v1, %s1334_s15  ;;  %v418_v28 = vld [vmem:[%s376_s19] sm:$0xff]  ;;  %s380_s23 = scalar_lea.vmem %s1687_s3, %s1208_s20  ;;  %v419_v30 = vld [vmem:[%s376_s19 + $0x8] sm:$0x33]  ;;  %s1273_s24 = sshll.u32 %s1695_s12, 3 }
  0x11   : > { %v420_v31 = vunpack.c.l.bf16 %v418_v28  ;;  %v421_v32 = vunpack.c.h.bf16 %v418_v28  ;;  %v483_v33 = vld [vmem:[%s380_s23] sm:$0x3]  ;;  %v422_v34 = vunpack.c.l.bf16 %v419_v30  ;;  %v423_v35 = vunpack.c.h.bf16 %v419_v30  ;;  %s371_s27 = scalar_lea.vmem %s1685_s1, %s1273_s24  ;;  %s1345_s14 = smov 16  }
  0x12   : > { %v485_v36 = vsub.f32 1.0, %v483_v33  ;;  %v496_v62 = vperm.slane %v483_v33, 1  ;;  %s1346_s15 = smov 1  }
  0x14   : > { %v488_v42 = vperm.slane %v485_v36, 1  ;;  %v487_v56 = vperm.slane %v485_v36, 0 }
  0x16   : > { %v489_v57 = vrot.slane %v488_v42, 4 }
  0x82   : > { %v390_v2 = vpop.permute.xlu0 %389 }
  0x83   : > { %v392_v3 = vadd.f32 %v390_v2, %v387_v1 }
  0x85   : > { %v394_v4 = vsel %vm393_vm0, %v392_v3, -inf }
  0x86   : > { %395 = vmax.xlane.f32.xlu0 %v394_v4  ;;  %v491_v4 = vsel %vm490_vm6, %v487_v56, %v489_v57 }
  0xf9   : > { %v396_v5 = vpop.xlane.xlu0 %395 }
  0xfa   : > { %v397_v6 = vsub.f32 %v392_v3, %v396_v5  ;;  %v1431_v3 = vld [vmem:[%s371_s27] sm:$0x77]  ;;  %v495_v5 = vperm.slane %v483_v33, 0 }
  0xfc   : > { %v398_v7 = vmul.f32 1.442695, %v397_v6 }
  0xfe   : > { %1314 = vpow2.f32 %v398_v7 }
 0x104   : > { %v1315_v8 = vpop.eup %1314 }
 0x105   : > { %v400_v9 = vsel %vm393_vm0, %v1315_v8, 0.0  ;;  %vm774_vm0 = vcmask 392192  }
 0x106   : > { %401 = vadd.xlane.f32.xlu1 %v400_v9  ;;  %v493_v9 = vmul.f32 %v491_v4, %v1431_v3 }
 0x179   : > { %v402_v13 = vpop.xlane.xlu1 %401 }
 0x17a   : > { %1316 = vrcp.f32 %v402_v13  ;;  %v414_v17 = vand.u32 2147483648, %v402_v13  ;;  %v412_v19 = vand.u32 2147483647, %v402_v13  ;;  %vm408_vm2 = vweird.f32 %v402_v13 }
 0x17c   : > { %v415_v21 = vor.u32 1.1754944e-38, %v414_v17  ;;  %vm413_vm4 = vcmp.eq.f32.partialorder %v412_v19, 8.507059e+37  ;;  %v520_v19 = vlaneseq }
 0x180   : > { %v1317_v14 = vpop.eup %1316 }
 0x181   : > { %v404_v15 = vmul.f32 %v1317_v14, %v402_v13  ;;  %vm409_vm1 = vweird.f32 %v1317_v14 }
 0x182   : > { %vm410_vm3 = vmor %vm408_vm2, %vm409_vm1  ;;  %vm838_vm1 = vcmask 261120  }
 0x183   : > { %v405_v16 = vsub.f32 1.0, %v404_v15 }
 0x185   : > { %v406_v18 = vmul.f32 %v1317_v14, %v405_v16 }
 0x187   : > { %v407_v20 = vadd.f32 %v1317_v14, %v406_v18  ;;  %v1347_v18 = vmov 0.0|0.0  }
 0x188   : > { %699 = vst [vmem:[#allocation2 + $0x28] sm:$0xff] %v1347_v18  ;;  %v1211_v18 = vld [vmem:[%s1688_s4 + $0x1] ss:$8 sm:$0x3] }
 0x189   : > { %v411_v22 = vsel %vm410_vm3, %v1317_v14, %v407_v20 }
 0x18a   : > { %v416_v23 = vsel %vm413_vm4, %v415_v21, %v411_v22  ;;  %v1475_v21 = vand.u32 127, %v520_v19  ;;  %v1218_v22 = vld [vmem:[%s1688_s4 + $0x10] ss:$8 sm:$0x3] }
 0x18b   : > { %v417_v24 = vmul.f32 %v1315_v8, %v416_v23  ;;  %v688_v23 = vperm.slane %v1218_v22, 0 }
 0x18c   : > { %vm682_vm8 = vcmp.lt.s32.totalorder %v1475_v21, 111  ;;  %vm614_vm9 = vcmp.lt.s32.totalorder %v1475_v21, 127  ;;  %vm646_vm10 = vcmp.lt.s32.totalorder %v1475_v21, 112  ;;  %vm630_vm11 = vcmp.lt.s32.totalorder %v1475_v21, 113 }
 0x18d   : > { %v425_v25 = vperm.slane %v417_v24, 0  ;;  %v689_v24 = vperm.slane %v1218_v22, 1  ;;  %vm537_vm12 = vcmp.lt.s32.totalorder %v1475_v21, 16  ;;  %vm522_vm13 = vcmp.lt.s32.totalorder %v1475_v21, 17 }
 0x18e   : > { %vm569_vm14 = vcmp.lt.s32.totalorder %v1475_v21, 1  ;;  %vm553_vm15 = vcmp.lt.s32.totalorder %v1475_v21, 15 }
 0x18f   : > { %447 = vperm.xlu2 %1308, %v425_v25   ;;  %433 = vperm.xlu1 %1307, %v425_v25   ;;  %v1283_v36 = vld [vmem:[#allocation2 + $0x24] sm:$0xf0] }
 0x197   : > { %1309 = vset.pattern.permute.xlu2 %v1337_v12  ;;  %1312 = vset.pattern.permute.xlu1 %v1337_v12 }
 0x198   : > { %427 = vperm.xlu2 %1309, %v425_v25  }
 0x1a0   : > { %1310 = vset.pattern.permute.xlu2 %v1338_v26 }
 0x1a1   : > { %470 = vperm.xlu2 %1310, %v425_v25  }
 0x1a9   : > { %1311 = vset.pattern.permute.xlu2 %v1337_v12 }
 0x1e9   : > { %v448_v27 = vpop.permute.xlu2 %447 }
 0x1ea   : > { %v450_v37 = vmul.f32 %v448_v27, %v420_v31  ;;  %v451_v38 = vmul.f32 %v448_v27, %v421_v32  ;;  %v452_v39 = vmul.f32 %v448_v27, %v422_v34  ;;  %v453_v40 = vmul.f32 %v448_v27, %v423_v35 }
 0x1ec   : > { %v459_v44 = vrot.slane %v450_v37, 6  ;;  %v462_v45 = vrot.slane %v451_v38, 6  ;;  %v460_v50 = vrot.slane %v452_v39, 6  ;;  %v463_v51 = vrot.slane %v453_v40, 6  ;;  %v1247_v37 = vld [vmem:[#allocation2 + $0x28] sm:$0xf0] }
 0x1ee   : > { %v461_v60 = vsel %vm458_vm5, %v459_v44, %v460_v50  ;;  %v464_v61 = vsel %vm458_vm5, %v462_v45, %v463_v51 }
 0x1f2   : > { %v428_v29 = vpop.permute.xlu2 %427 }
 0x1f3   : > { %v430_v48 = vmul.f32 %v428_v29, %v420_v31  ;;  %v431_v49 = vmul.f32 %v428_v29, %v421_v32 }
 0x1fb   : > { %v471_v41 = vpop.permute.xlu2 %470 }
 0x1fc   : > { %v473_v52 = vmul.f32 %v471_v41, %v422_v34  ;;  %v474_v53 = vmul.f32 %v471_v41, %v423_v35  ;;  %v1215_v34 = vld [vmem:[%s1688_s4 + $0x5] ss:$8 sm:$0x3]  ;;  %v1214_v35 = vld [vmem:[%s1688_s4 + $0x4] ss:$8 sm:$0x3] }
 0x1fd   : > { %v620_v38 = vperm.slane %v1215_v34, 0  ;;  %v621_v39 = vperm.slane %v1215_v34, 1  ;;  %v604_v42 = vperm.slane %v1214_v35, 0 }
 0x1fe   : > { %v477_v63 = vrot.slane %v473_v52, 1  ;;  %v478_v0 = vrot.slane %v474_v53, 1 }
 0x201   : > { %v434_v43 = vpop.permute.xlu1 %433 }
 0x202   : > { %v436_v46 = vmul.f32 %v434_v43, %v420_v31  ;;  %v437_v47 = vmul.f32 %v434_v43, %v421_v32  ;;  %v605_v43 = vperm.slane %v1214_v35, 1 }
 0x204   : > { %v440_v54 = vrot.slane %v436_v46, 3  ;;  %v441_v55 = vrot.slane %v437_v47, 3 }
 0x206   : > { %v444_v58 = vadd.f32 %v440_v54, %v430_v48  ;;  %v445_v59 = vadd.f32 %v441_v55, %v431_v49 }
 0x208   : > { %v467_v1 = vadd.f32 %v461_v60, %v444_v58  ;;  %v468_v2 = vadd.f32 %v464_v61, %v445_v59  ;;  %v1217_v59 = vld [vmem:[%s1688_s4 + $0x7] ss:$8 sm:$0x3] }
 0x20a   : > { %v481_v6 = vadd.f32 %v477_v63, %v467_v1  ;;  %v482_v7 = vadd.f32 %v478_v0, %v468_v2  ;;  %v653_v63 = vperm.slane %v1217_v59, 1  ;;  %v1216_v2 = vld [vmem:[%s1688_s4 + $0x6] ss:$8 sm:$0x3] }
 0x20c   : > { %v500_v8 = vmul.f32 %v496_v62, %v482_v7  ;;  %v499_v10 = vmul.f32 %v495_v5, %v481_v6  ;;  %v636_v6 = vperm.slane %v1216_v2, 0  ;;  %v637_v7 = vperm.slane %v1216_v2, 1 }
 0x20e   : > { %v503_v11 = vrot.slane %v500_v8, 4 }
 0x210   : > { %v504_v12 = vsel %vm490_vm6, %v499_v10, %v503_v11 }
 0x211   : > { %v1436_v13 = vadd.f32 %v504_v12, %v493_v9 }
 0x213   : > { %508 = vst [vmem:[#allocation1] ss:$2 sm:$0xff] %v1436_v13 }
 0x21a   : > { %v509_v14 = vld.sshfl [vmem:[#allocation1] sm:$0xff pattern:$0x75316420]  ;;  %v510_v15 = vld.sshfl [vmem:[#allocation1 + $0x8] sm:$0xff pattern:$0x75316420] }
 0x21b   : > { %v1439_v16 = vsel %vm513_vm7, %v509_v14, %v495_v5  ;;  %v1441_v17 = vsel %vm513_vm7, %v510_v15, %v496_v62  ;;  %v652_v62 = vperm.slane %v1217_v59, 0 }
 0x21c   : > { %628 = vrot.lane.b32.xlu0 %v1441_v17, %s1339_s28  ;;  %610 = vrot.lane.b32.xlu1 %v1439_v16, %s1340_s29  ;;  %v609_v52 = vmul.f32 %v605_v43, %v1441_v17  ;;  %v608_v53 = vmul.f32 %v604_v42, %v1439_v16 }
 0x21d   : > { %678 = vrot.lane.b32.xlu2 %v1439_v16, %s1341_s30 }
 0x224   : > { %516 = vrot.lane.b32.xlu0 %v1439_v16, %s1342_s10  ;;  %642 = vrot.lane.b32.xlu1 %v1439_v16, %s1343_s8 }
 0x225   : > { %680 = vrot.lane.b32.xlu2 %v1441_v17, %s1341_s30 }
 0x22c   : > { %551 = vrot.lane.b32.xlu0 %v1441_v17, %s1344_s13  ;;  %626 = vrot.lane.b32.xlu1 %v1439_v16, %s1339_s28 }
 0x22d   : > { %612 = vrot.lane.b32.xlu2 %v1441_v17, %s1340_s29 }
 0x234   : > { %535 = vrot.lane.b32.xlu1 %v1441_v17, %s1345_s14 }
 0x235   : > { %644 = vrot.lane.b32.xlu2 %v1441_v17, %s1343_s8 }
 0x23c   : > { %567 = vrot.lane.b32.xlu1 %v1441_v17, %s1346_s15 }
 0x23d   : > { %533 = vrot.lane.b32.xlu2 %v1439_v16, %s1345_s14 }
 0x244   : > { %549 = vrot.lane.b32.xlu1 %v1439_v16, %s1344_s13 }
 0x245   : > { %565 = vrot.lane.b32.xlu2 %v1439_v16, %s1346_s15 }
 0x24d   : > { %518 = vrot.lane.b32.xlu2 %v1441_v17, %s1342_s10 }
 0x277   : > { %v679_v20 = vpop.permute.xlu2 %678 }
 0x27f   : > { %v681_v25 = vpop.permute.xlu2 %680 }
 0x280   : > { %v683_v26 = vsel %vm682_vm8, %v679_v20, %v681_v25  ;;  %v684_v27 = vsel %vm682_vm8, %v681_v25, %v679_v20  ;;  %v544_v25 = vperm.slane %v1211_v18, 1 }
 0x281   : > { %v692_v28 = vmul.f32 %v688_v23, %v683_v26  ;;  %v693_v29 = vmul.f32 %v689_v24, %v684_v27  ;;  %v525_v23 = vld [vmem:[%s1688_s4] ss:$8 sm:$0x3]  ;;  %v543_v24 = vperm.slane %v1211_v18, 0 }
 0x282   : > { %v527_v27 = vperm.slane %v525_v23, 0 }
 0x283   : > { %v694_v30 = vsel %vm490_vm6, %v692_v28, 0.0  ;;  %v695_v31 = vsel %vm490_vm6, %v693_v29, 0.0  ;;  %v528_v28 = vperm.slane %v525_v23, 1 }
 0x284   : > { %v696_v32 = vpack.c.bf16 %v695_v31, %v694_v30 }
 0x286   : > { %698 = vst [vmem:[#allocation2 + $0x20] sm:$0xff] %v696_v32 }
 0x287   : > { %v613_v33 = vpop.permute.xlu2 %612 }
 0x28d   : > { %v1245_v40 = vld [vmem:[#allocation2 + $0x20] sm:$0xf]  ;;  %v1282_v41 = vld [vmem:[#allocation2 + $0x24] sm:$0xf] }
 0x28e   : > { %v611_v44 = vpop.permute.xlu1 %610  ;;  %v1246_v45 = vor.u32 %v1283_v36, %v1245_v40  ;;  %v1250_v46 = vor.u32 %v1282_v41, %v1247_v37  ;;  %v629_v8 = vpop.permute.xlu0 %628  ;;  %v710_v41 = vld [vmem:[%s1690_s6] sm:$0xff] }
 0x28f   : > { %v615_v47 = vsel %vm614_vm9, %v611_v44, %v613_v33  ;;  %v616_v48 = vsel %vm614_vm9, %v613_v33, %v611_v44  ;;  %v645_v49 = vpop.permute.xlu2 %644  ;;  %716 = vperm.xlu0 %1313, %v710_v41  }
 0x290   : > { %v624_v50 = vmul.f32 %v620_v38, %v615_v47  ;;  %v625_v51 = vmul.f32 %v621_v39, %v616_v48  ;;  %786 = vmatpush.bf16.msra.mxu0 %v1246_v45  ;;  %805 = vmatpush.bf16.msra.mxu1 %v1250_v46 }
 0x292   : > { %v660_v54 = vrot.slane %v624_v50, 4  ;;  %v661_v55 = vrot.slane %v625_v51, 4 }
 0x294   : > { %v670_v56 = vsel %vm490_vm6, %v608_v53, %v660_v54  ;;  %v671_v57 = vsel %vm490_vm6, %v609_v52, %v661_v55 }
 0x295   : > { %v674_v58 = vpack.c.bf16 %v671_v57, %v670_v56  ;;  %v1212_v57 = vld [vmem:[%s1688_s4 + $0x2] ss:$8 sm:$0x3] }
 0x296   : > { %v643_v60 = vpop.permute.xlu1 %642  ;;  %v517_v29 = vpop.permute.xlu0 %516 }
 0x297   : > { %676 = vst [vmem:[#allocation2 + $0x10] sm:$0xff] %v674_v58  ;;  %v534_v61 = vpop.permute.xlu2 %533  ;;  %v647_v0 = vsel %vm646_vm10, %v643_v60, %v645_v49  ;;  %v648_v1 = vsel %vm646_vm10, %v645_v49, %v643_v60  ;;  %v1213_v49 = vld [vmem:[%s1688_s4 + $0x3] ss:$8 sm:$0x3]  ;;  %v559_v60 = vperm.slane %v1212_v57, 0 }
 0x298   : > { %v656_v4 = vmul.f32 %v652_v62, %v647_v0  ;;  %v657_v5 = vmul.f32 %v653_v63, %v648_v1  ;;  %v575_v53 = vperm.slane %v1213_v49, 0  ;;  %v576_v54 = vperm.slane %v1213_v49, 1 }
 0x29a   : > { %v666_v14 = vrot.slane %v656_v4, 4  ;;  %v667_v15 = vrot.slane %v657_v5, 4 }
 0x29e   : > { %v627_v9 = vpop.permute.xlu1 %626  ;;  %v1237_v42 = vld [vmem:[#allocation2 + $0x10] sm:$0xf]  ;;  %v1280_v46 = vld [vmem:[#allocation2 + $0x14] sm:$0xf]  ;;  %v552_v62 = vpop.permute.xlu0 %551 }
 0x29f   : > { %v631_v10 = vsel %vm630_vm11, %v627_v9, %v629_v8  ;;  %v632_v11 = vsel %vm630_vm11, %v629_v8, %v627_v9  ;;  %v566_v12 = vpop.permute.xlu2 %565  ;;  %v713_v9 = vld [vmem:[%s1690_s6 + $0x18] sm:$0xff] }
 0x2a0   : > { %v640_v16 = vmul.f32 %v636_v6, %v631_v10  ;;  %v641_v17 = vmul.f32 %v637_v7, %v632_v11  ;;  %v712_v10 = vld [vmem:[%s1690_s6 + $0x10] sm:$0xff]  ;;  %731 = vperm.xlu1 %1312, %v713_v9  }
 0x2a1   : > { %726 = vperm.xlu2 %1311, %v712_v10  }
 0x2a2   : > { %v672_v19 = vsel %vm490_vm6, %v640_v16, %v666_v14  ;;  %v673_v20 = vsel %vm490_vm6, %v641_v17, %v667_v15 }
 0x2a3   : > { %v675_v22 = vpack.c.bf16 %v673_v20, %v672_v19  ;;  %v1276_v20 = vld [vmem:[%s1689_s5] sm:$0xff] }
 0x2a5   : > { %677 = vst [vmem:[#allocation2 + $0x18] sm:$0xff] %v675_v22  ;;  %v1277_v22 = vld [vmem:[%s1689_s5 + $0x8] sm:$0xff] }
 0x2a6   : > { %v536_v26 = vpop.permute.xlu1 %535 }
 0x2a7   : > { %v538_v30 = vsel %vm537_vm12, %v534_v61, %v536_v26  ;;  %v539_v31 = vsel %vm537_vm12, %v536_v26, %v534_v61  ;;  %v519_v32 = vpop.permute.xlu2 %518  ;;  %v560_v61 = vperm.slane %v1212_v57, 1 }
 0x2a8   : > { %v547_v33 = vmul.f32 %v543_v24, %v539_v31  ;;  %v548_v34 = vmul.f32 %v544_v25, %v538_v30  ;;  %v523_v35 = vsel %vm522_vm13, %v517_v29, %v519_v32  ;;  %v524_v36 = vsel %vm522_vm13, %v519_v32, %v517_v29 }
 0x2a9   : > { %v531_v39 = vmul.f32 %v527_v27, %v524_v36  ;;  %v532_v40 = vmul.f32 %v528_v28, %v523_v35 }
 0x2aa   : > { %v583_v37 = vrot.slane %v547_v33, 4  ;;  %v584_v38 = vrot.slane %v548_v34, 4 }
 0x2ac   : > { %v593_v43 = vsel %vm490_vm6, %v531_v39, %v583_v37  ;;  %v594_v44 = vsel %vm490_vm6, %v532_v40, %v584_v38  ;;  %v1281_v45 = vld [vmem:[#allocation2 + $0x14] sm:$0xf0]  ;;  %v1239_v47 = vld [vmem:[#allocation2 + $0x18] sm:$0xf0] }
 0x2ad   : > { %v597_v48 = vpack.c.bf16 %v594_v44, %v593_v43  ;;  %v1238_v50 = vor.u32 %v1281_v45, %v1237_v42  ;;  %v1242_v51 = vor.u32 %v1280_v46, %v1239_v47 }
 0x2ae   : > { %v568_v52 = vpop.permute.xlu1 %567 }
 0x2af   : > { %599 = vst [vmem:[#allocation2] sm:$0xff] %v597_v48  ;;  %787 = vmatpush.bf16.msra.mxu0 %v1238_v50  ;;  %806 = vmatpush.bf16.msra.mxu1 %v1242_v51  ;;  %v570_v55 = vsel %vm569_vm14, %v566_v12, %v568_v52  ;;  %v571_v56 = vsel %vm569_vm14, %v568_v52, %v566_v12  ;;  %v711_v12 = vld [vmem:[%s1690_s6 + $0x8] sm:$0xff] }
 0x2b0   : > { %v579_v58 = vmul.f32 %v575_v53, %v571_v56  ;;  %v580_v59 = vmul.f32 %v576_v54, %v570_v55  ;;  %721 = vperm.xlu2 %1311, %v711_v12   ;;  %v1284_v55 = vld [vmem:[%s1691_s7] sm:$0xff] }
 0x2b2   : > { %v589_v2 = vrot.slane %v579_v58, 4  ;;  %v590_v4 = vrot.slane %v580_v59, 4 }
 0x2b6   : > { %v550_v63 = vpop.permute.xlu1 %549  ;;  %v1229_v14 = vld [vmem:[#allocation2] sm:$0xf]  ;;  %v1278_v16 = vld [vmem:[#allocation2 + $0x4] sm:$0xf] }
 0x2b7   : > { %v554_v0 = vsel %vm553_vm15, %v550_v63, %v552_v62  ;;  %v555_v1 = vsel %vm553_vm15, %v552_v62, %v550_v63 }
 0x2b8   : > { %v563_v5 = vmul.f32 %v559_v60, %v555_v1  ;;  %v564_v6 = vmul.f32 %v560_v61, %v554_v0 }
 0x2ba   : > { %v595_v7 = vsel %vm490_vm6, %v563_v5, %v589_v2  ;;  %v596_v8 = vsel %vm490_vm6, %v564_v6, %v590_v4 }
 0x2bb   : > { %v598_v11 = vpack.c.bf16 %v596_v8, %v595_v7  ;;  %v1040_v8 = vld [vmem:[#allocation3] sm:$0x1] }
 0x2bd   : > { %600 = vst [vmem:[#allocation2 + $0x8] sm:$0xff] %v598_v11 }
 0x2c4   : > { %v1279_v15 = vld [vmem:[#allocation2 + $0x4] sm:$0xf0]  ;;  %v1231_v17 = vld [vmem:[#allocation2 + $0x8] sm:$0xf0] }
 0x2c5   : > { %v1230_v18 = vor.u32 %v1279_v15, %v1229_v14  ;;  %v1234_v19 = vor.u32 %v1278_v16, %v1231_v17 }
 0x2c7   : > { %788 = vmatpush.bf16.msra.mxu0 %v1230_v18  ;;  %807 = vmatpush.bf16.msra.mxu1 %v1234_v19  ;;  %v1261_v18 = vld [vmem:[%s1688_s4 + $0x1] ss:$8 sm:$0x3]  ;;  %v876_v19 = vld [vmem:[%s1688_s4] ss:$8 sm:$0x3] }
 0x2ca   : > { %1251 = vmatmul.msk.bf16.vlgmr.msra.gmra.mxu0 %vm774_vm0, %v1276_v20  ;;  %1253 = vmatmul.msk.bf16.vlgmr.msra.gmra.mxu1 %vm774_vm0, %v1276_v20  ;;  %v1262_v20 = vld [vmem:[%s1688_s4 + $0x2] ss:$8 sm:$0x3] }
 0x2da   : > { %1252 = vmatmul.msk.bf16.gmra.mxu0 %vm774_vm0, %v1277_v22  ;;  %1254 = vmatmul.msk.bf16.gmra.mxu1 %vm774_vm0, %v1277_v22  ;;  %v900_v22 = vperm.slane %v1261_v18, 0 }
 0x2fb   : > { %v727_v27 = vpop.permute.xlu2 %726 }
 0x301   : > { %v717_v32 = vpop.permute.xlu0 %716 }
 0x30a   : > { %v722_v30 = vpop.permute.xlu2 %721 }
 0x312   : > { %v732_v31 = vpop.permute.xlu1 %731 }
 0x347   : > { %v790_v23 = vpop.f32.mrf.mxu0  ;;  %v809_v24 = vpop.f32.mrf.mxu1 }
 0x348   : > { %v791_v41 = vadd.f32 %v790_v23, %v717_v32  ;;  %v810_v42 = vadd.f32 %v809_v24, %v717_v32  ;;  %v901_v23 = vperm.slane %v1261_v18, 1 }
 0x34a   : > { %v819_v51 = vmax.f32 %v791_v41, 0.0  ;;  %v820_v52 = vmax.f32 %v810_v42, 0.0 }
 0x34f   : > { %v792_v25 = vpop.f32.mrf.mxu0  ;;  %v811_v26 = vpop.f32.mrf.mxu1 }
 0x350   : > { %v793_v37 = vadd.f32 %v792_v25, %v722_v30  ;;  %v812_v38 = vadd.f32 %v811_v26, %v722_v30  ;;  %v921_v30 = vperm.slane %v1262_v20, 1 }
 0x352   : > { %v821_v47 = vmax.f32 %v793_v37, 0.0  ;;  %v822_v48 = vmax.f32 %v812_v38, 0.0  ;;  %v1264_v38 = vld [vmem:[%s1688_s4 + $0x4] ss:$8 sm:$0x3] }
 0x354   : > { %v829_v53 = vpack.c.bf16 %v821_v47, %v819_v51  ;;  %v830_v54 = vpack.c.bf16 %v822_v48, %v820_v52 }
 0x357   : > { %v795_v28 = vpop.f32.mrf.mxu0  ;;  %v814_v29 = vpop.f32.mrf.mxu1 }
 0x358   : > { %v796_v33 = vadd.f32 %v795_v28, %v727_v27  ;;  %v815_v34 = vadd.f32 %v814_v29, %v727_v27  ;;  %v878_v27 = vperm.slane %v876_v19, 0  ;;  %v879_v28 = vperm.slane %v876_v19, 1 }
 0x359   : > { %v920_v29 = vperm.slane %v1262_v20, 0 }
 0x35a   : > { %v823_v43 = vmax.f32 %v796_v33, 0.0  ;;  %v824_v44 = vmax.f32 %v815_v34, 0.0 }
 0x35f   : > { %v797_v35 = vpop.f32.mrf.mxu0  ;;  %v816_v36 = vpop.f32.mrf.mxu1 }
 0x360   : > { %v798_v39 = vadd.f32 %v797_v35, %v732_v31  ;;  %v817_v40 = vadd.f32 %v816_v36, %v732_v31 }
 0x362   : > { %v825_v45 = vmax.f32 %v798_v39, 0.0  ;;  %v826_v46 = vmax.f32 %v817_v40, 0.0  ;;  %v1263_v40 = vld [vmem:[%s1688_s4 + $0x3] ss:$8 sm:$0x3] }
 0x364   : > { %v831_v49 = vpack.c.bf16 %v825_v45, %v823_v43  ;;  %v832_v50 = vpack.c.bf16 %v826_v46, %v824_v44  ;;  %v950_v45 = vperm.slane %v1264_v38, 0  ;;  %v951_v46 = vperm.slane %v1264_v38, 1 }
 0x366   : > { %848 = vmatpush.bf16.msra.mxu2 %v831_v49  ;;  %862 = vmatpush.bf16.msra.mxu3 %v832_v50  ;;  %v940_v49 = vperm.slane %v1263_v40, 0  ;;  %v941_v50 = vperm.slane %v1263_v40, 1 }
 0x36a   : > { %849 = vmatpush.bf16.msra.mxu2 %v829_v53  ;;  %863 = vmatpush.bf16.msra.mxu3 %v830_v54  ;;  %v1265_v54 = vld [vmem:[%s1688_s4 + $0x5] ss:$8 sm:$0x3] }
 0x36d   : > { %1259 = vmatmul.msk.bf16.vlgmr.msra.gmra.mxu2 %vm838_vm1, %v1284_v55  ;;  %1260 = vmatmul.msk.bf16.vlgmr.msra.gmra.mxu3 %vm838_vm1, %v1284_v55 }
 0x3f0   : > { %v1577_v56 = vpop.f32.mrf.mxu2  ;;  %v1579_v57 = vpop.f32.mrf.mxu3 }
 0x3f1   : > { %870 = vrot.lane.b32.xlu1 %v1577_v56, %s1342_s10  ;;  %872 = vrot.lane.b32.xlu2 %v1579_v57, %s1342_s10  ;;  %v889_v58 = vrot.slane %v1579_v57, 1  ;;  %v888_v59 = vrot.slane %v1577_v56, 1  ;;  %v908_v60 = vrot.slane %v1577_v56, 2  ;;  %v928_v61 = vrot.slane %v1577_v56, 3  ;;  %s385_s10 = scalar_lea.vmem %s1693_s9, %s1273_s24 }
 0x3f2   : > { %v929_v62 = vrot.slane %v1579_v57, 3  ;;  %v909_v63 = vrot.slane %v1579_v57, 2  ;;  %v965_v0 = vrot.slane %v1579_v57, 5  ;;  %v984_v1 = vrot.slane %v1577_v56, 6 }
 0x3f3   : > { %894 = vrot.lane.b32.xlu0 %v889_v58, %s1345_s14  ;;  %v964_v2 = vrot.slane %v1577_v56, 5  ;;  %v1004_v4 = vrot.slane %v1577_v56, 7  ;;  %v1005_v5 = vrot.slane %v1579_v57, 7  ;;  %v985_v6 = vrot.slane %v1579_v57, 6 }
 0x3f8   : > { %v867_v7 = vpop.f32.mrf.mxu3  ;;  %v853_v9 = vpop.f32.mrf.mxu2 }
 0x3f9   : > { %892 = vrot.lane.b32.xlu1 %v888_v59, %s1345_s14  ;;  %912 = vrot.lane.b32.xlu2 %v908_v60, %s1344_s13  ;;  %v954_v59 = vmul.f32 %v950_v45, %v1577_v56  ;;  %v955_v60 = vmul.f32 %v951_v46, %v1579_v57 }
 0x3fb   : > { %932 = vrot.lane.b32.xlu0 %v928_v61, %s1346_s15  ;;  %v1266_v61 = vld [vmem:[%s1688_s4 + $0x6] ss:$8 sm:$0x3] }
 0x3fc   : > { %v996_v56 = vperm.slane %v1266_v61, 0 }
 0x401   : > { %934 = vrot.lane.b32.xlu2 %v929_v62, %s1346_s15  ;;  %914 = vrot.lane.b32.xlu1 %v909_v63, %s1344_s13 }
 0x403   : > { %970 = vrot.lane.b32.xlu0 %v965_v0, %s1340_s29  ;;  %v976_v0 = vperm.slane %v1265_v54, 0 }
 0x409   : > { %988 = vrot.lane.b32.xlu2 %v984_v1, %s1339_s28  ;;  %968 = vrot.lane.b32.xlu1 %v964_v2, %s1340_s29  ;;  %v977_v1 = vperm.slane %v1265_v54, 1 }
 0x40b   : > { %1008 = vrot.lane.b32.xlu0 %v1004_v4, %s1343_s8 }
 0x411   : > { %1010 = vrot.lane.b32.xlu2 %v1005_v5, %s1343_s8  ;;  %990 = vrot.lane.b32.xlu1 %v985_v6, %s1339_s28 }
 0x413   : > { %1026 = vrot.lane.b32.xlu0 %v867_v7, %s1341_s30 }
 0x419   : > { %1043 = vperm.xlu2 %1311, %v1040_v8   ;;  %1024 = vrot.lane.b32.xlu1 %v853_v9, %s1341_s30  ;;  %v997_v8 = vperm.slane %v1266_v61, 1  ;;  %v958_v9 = vrot.slane %v954_v59, 4 }
 0x44b   : > { %v873_v10 = vpop.permute.xlu2 %872 }
 0x453   : > { %v913_v12 = vpop.permute.xlu2 %912 }
 0x45b   : > { %v935_v17 = vpop.permute.xlu2 %934 }
 0x463   : > { %v871_v11 = vpop.permute.xlu1 %870  ;;  %v989_v39 = vpop.permute.xlu2 %988 }
 0x464   : > { %v874_v31 = vsel %vm522_vm13, %v871_v11, %v873_v10  ;;  %v875_v32 = vsel %vm522_vm13, %v873_v10, %v871_v11  ;;  %v959_v10 = vrot.slane %v955_v60, 4 }
 0x465   : > { %v895_v14 = vpop.permute.xlu0 %894  ;;  %v882_v41 = vmul.f32 %v878_v27, %v875_v32  ;;  %v883_v42 = vmul.f32 %v879_v28, %v874_v31 }
 0x46b   : > { %v893_v15 = vpop.permute.xlu1 %892  ;;  %v1011_v57 = vpop.permute.xlu2 %1010 }
 0x46c   : > { %v896_v25 = vsel %vm537_vm12, %v893_v15, %v895_v14  ;;  %v897_v26 = vsel %vm537_vm12, %v895_v14, %v893_v15  ;;  %v1267_v15 = vld [vmem:[%s1688_s4 + $0x7] ss:$8 sm:$0x3] }
 0x46d   : > { %v933_v16 = vpop.permute.xlu0 %932  ;;  %v904_v35 = vmul.f32 %v900_v22, %v897_v26  ;;  %v905_v36 = vmul.f32 %v901_v23, %v896_v25  ;;  %v1268_v23 = vld [vmem:[%s1688_s4 + $0x10] ss:$8 sm:$0x3]  ;;  %v1016_v26 = vperm.slane %v1267_v15, 0  ;;  %v1017_v27 = vperm.slane %v1267_v15, 1 }
 0x46e   : > { %v936_v52 = vsel %vm569_vm14, %v933_v16, %v935_v17  ;;  %v937_v53 = vsel %vm569_vm14, %v935_v17, %v933_v16  ;;  %v1032_v32 = vperm.slane %v1268_v23, 0 }
 0x46f   : > { %v906_v47 = vadd.f32 %v904_v35, %v882_v41  ;;  %v907_v48 = vadd.f32 %v905_v36, %v883_v42  ;;  %v944_v62 = vmul.f32 %v940_v49, %v937_v53  ;;  %v945_v63 = vmul.f32 %v941_v50, %v936_v52 }
 0x473   : > { %v915_v24 = vpop.permute.xlu1 %914  ;;  %v1044_v38 = vpop.permute.xlu2 %1043 }
 0x474   : > { %v916_v33 = vsel %vm553_vm15, %v913_v12, %v915_v24  ;;  %v917_v34 = vsel %vm553_vm15, %v915_v24, %v913_v12  ;;  %v1046_v45 = vperm.slane %v1044_v38, 0 }
 0x475   : > { %v971_v37 = vpop.permute.xlu0 %970  ;;  %v924_v43 = vmul.f32 %v920_v29, %v917_v34  ;;  %v925_v44 = vmul.f32 %v921_v30, %v916_v33  ;;  %v1033_v33 = vperm.slane %v1268_v23, 1 }
 0x477   : > { %v926_v55 = vadd.f32 %v924_v43, %v906_v47  ;;  %v927_v58 = vadd.f32 %v925_v44, %v907_v48 }
 0x479   : > { %v946_v5 = vadd.f32 %v944_v62, %v926_v55  ;;  %v947_v6 = vadd.f32 %v945_v63, %v927_v58 }
 0x47b   : > { %v969_v51 = vpop.permute.xlu1 %968  ;;  %v962_v18 = vadd.f32 %v958_v9, %v946_v5  ;;  %v963_v19 = vadd.f32 %v959_v10, %v947_v6 }
 0x47c   : > { %v972_v2 = vsel %vm614_vm9, %v969_v51, %v971_v37  ;;  %v973_v4 = vsel %vm614_vm9, %v971_v37, %v969_v51 }
 0x47d   : > { %v1009_v7 = vpop.permute.xlu0 %1008  ;;  %v980_v11 = vmul.f32 %v976_v0, %v972_v2  ;;  %v981_v12 = vmul.f32 %v977_v1, %v973_v4 }
 0x47e   : > { %v1012_v28 = vsel %vm646_vm10, %v1009_v7, %v1011_v57  ;;  %v1013_v29 = vsel %vm646_vm10, %v1011_v57, %v1009_v7 }
 0x47f   : > { %v982_v24 = vadd.f32 %v980_v11, %v962_v18  ;;  %v983_v25 = vadd.f32 %v981_v12, %v963_v19  ;;  %v1020_v34 = vmul.f32 %v1016_v26, %v1012_v28  ;;  %v1021_v35 = vmul.f32 %v1017_v27, %v1013_v29 }
 0x483   : > { %v991_v14 = vpop.permute.xlu1 %990 }
 0x484   : > { %v992_v16 = vsel %vm630_vm11, %v989_v39, %v991_v14  ;;  %v993_v17 = vsel %vm630_vm11, %v991_v14, %v989_v39 }
 0x485   : > { %v1000_v20 = vmul.f32 %v996_v56, %v992_v16  ;;  %v1001_v22 = vmul.f32 %v997_v8, %v993_v17  ;;  %v1027_v36 = vpop.permute.xlu0 %1026 }
 0x487   : > { %v1002_v30 = vadd.f32 %v1000_v20, %v982_v24  ;;  %v1003_v31 = vadd.f32 %v1001_v22, %v983_v25 }
 0x489   : > { %v1022_v41 = vadd.f32 %v1020_v34, %v1002_v30  ;;  %v1023_v42 = vadd.f32 %v1021_v35, %v1003_v31 }
 0x48b   : > { %v1025_v37 = vpop.permute.xlu1 %1024 }
 0x48c   : > { %v1028_v39 = vsel %vm682_vm8, %v1025_v37, %v1027_v36  ;;  %v1029_v40 = vsel %vm682_vm8, %v1027_v36, %v1025_v37 }
 0x48d   : > { %v1036_v43 = vmul.f32 %v1032_v32, %v1028_v39  ;;  %v1037_v44 = vmul.f32 %v1033_v33, %v1029_v40 }
 0x48f   : > { %v1038_v46 = vadd.f32 %v1036_v43, %v1022_v41  ;;  %v1039_v47 = vadd.f32 %v1037_v44, %v1023_v42 }
 0x491   : > { %v1047_v48 = vadd.f32 %v1046_v45, %v1038_v46  ;;  %v1048_v49 = vadd.f32 %v1046_v45, %v1039_v47 }
 0x493   : > { %v1269_v50 = vmul.f32 -1.442695, %v1047_v48  ;;  %v1270_v51 = vmul.f32 -1.442695, %v1048_v49 }
 0x495   : > { %1318 = vpow2.f32 %v1269_v50 }
 0x496   : > { %1320 = vpow2.f32 %v1270_v51 }
 0x49b   : > { %v1319_v52 = vpop.eup %1318 }
 0x49c   : > { %v1321_v53 = vpop.eup %1320  ;;  %v1055_v54 = vadd.f32 1.0, %v1319_v52 }
 0x49d   : > { %v1056_v55 = vadd.f32 1.0, %v1321_v53 }
 0x49e   : > { %1322 = vrcp.f32 %v1055_v54  ;;  %v1068_v62 = vand.u32 2147483648, %v1055_v54  ;;  %v1066_v1 = vand.u32 2147483647, %v1055_v54  ;;  %vm1062_vm4 = vweird.f32 %v1055_v54 }
 0x49f   : > { %1324 = vrcp.f32 %v1056_v55  ;;  %v1083_v2 = vand.u32 2147483648, %v1056_v55  ;;  %v1081_v5 = vand.u32 2147483647, %v1056_v55  ;;  %vm1077_vm7 = vweird.f32 %v1056_v55 }
 0x4a0   : > { %v1069_v7 = vor.u32 1.1754944e-38, %v1068_v62  ;;  %vm1067_vm8 = vcmp.eq.f32.partialorder %v1066_v1, 8.507059e+37 }
 0x4a1   : > { %v1084_v57 = vor.u32 1.1754944e-38, %v1083_v2  ;;  %vm1082_vm10 = vcmp.eq.f32.partialorder %v1081_v5, 8.507059e+37 }
 0x4a4   : > { %v1323_v21 = vpop.eup %1322 }
 0x4a5   : > { %v1325_v58 = vpop.eup %1324  ;;  %v1058_v59 = vmul.f32 %v1323_v21, %v1055_v54  ;;  %vm1063_vm2 = vweird.f32 %v1323_v21 }
 0x4a6   : > { %v1073_v60 = vmul.f32 %v1325_v58, %v1056_v55  ;;  %vm1078_vm3 = vweird.f32 %v1325_v58  ;;  %vm1064_vm5 = vmor %vm1062_vm4, %vm1063_vm2 }
 0x4a7   : > { %v1059_v61 = vsub.f32 1.0, %v1058_v59  ;;  %vm1079_vm9 = vmor %vm1077_vm7, %vm1078_vm3 }
 0x4a8   : > { %v1074_v63 = vsub.f32 1.0, %v1073_v60 }
 0x4a9   : > { %v1060_v0 = vmul.f32 %v1323_v21, %v1059_v61 }
 0x4aa   : > { %v1075_v4 = vmul.f32 %v1325_v58, %v1074_v63 }
 0x4ab   : > { %v1061_v6 = vadd.f32 %v1323_v21, %v1060_v0 }
 0x4ac   : > { %v1076_v56 = vadd.f32 %v1325_v58, %v1075_v4 }
 0x4ad   : > { %v1065_v8 = vsel %vm1064_vm5, %v1323_v21, %v1061_v6 }
 0x4ae   : > { %v1070_v9 = vsel %vm1067_vm8, %v1069_v7, %v1065_v8  ;;  %v1080_v10 = vsel %vm1079_vm9, %v1325_v58, %v1076_v56 }
 0x4af   : > { %v1085_v11 = vsel %vm1082_vm10, %v1084_v57, %v1080_v10  ;;  %v1087_v12 = vmul.f32 0.1, %v1070_v9 }
 0x4b0   : > { %v1088_v14 = vmul.f32 0.1, %v1085_v11 }
 0x4b1   : > { %v1089_v15 = vadd.f32 0.9, %v1087_v12 }
 0x4b2   : > { %v1090_v16 = vadd.f32 0.9, %v1088_v14 }
 0x4b3   : > { %v1091_v17 = vsub.f32 1.0, %v1089_v15  ;;  %v1101_v22 = vperm.slane %v1089_v15, 0 }
 0x4b4   : > { %v1092_v18 = vsub.f32 1.0, %v1090_v16  ;;  %v1102_v19 = vperm.slane %v1090_v16, 0 }
 0x4b5   : > { %v1093_v24 = vperm.slane %v1091_v17, 0 }
 0x4b6   : > { %v1094_v20 = vperm.slane %v1092_v18, 0  ;;  %v1105_v23 = vrot.slane %v1102_v19, 4 }
 0x4b8   : > { %v1097_v25 = vrot.slane %v1094_v20, 4  ;;  %v1106_v26 = vsel %vm490_vm6, %v1101_v22, %v1105_v23 }
 0x4b9   : > { %v1108_v29 = vmul.f32 %v1106_v26, %v1436_v13 }
 0x4ba   : > { %v1098_v27 = vsel %vm490_vm6, %v1093_v24, %v1097_v25 }
 0x4bb   : > { %v1100_v28 = vmul.f32 %v1098_v27, %v1431_v3 }
 0x4bd   : > { %v1109_v30 = vadd.f32 %v1108_v29, %v1100_v28 }
 0x4bf   : > { %1110 = vst [vmem:[%s385_s10] sm:$0x77] %v1109_v30 }
 0x4c0 PF: > { %s21_s11 = sadd.s32 1, %s1332_s11  }
 0x4c1   : > { %p18_p4 = scmp.ge.s32.totalorder %s21_s11, 4  }
 0x4c3   :  { %20 = sbr.rel (!%p18_p4) target bundleno = 3 (0x3), region = 103 }

</bundles_post_ra>
